<compile_context>
chip_gen: v6e
topology: v6e:2x2x1
jax: 0.10.0
libtpu: 0.0.40
codegen_flags: <defaults>
</compile_context>

<pallas_src>
import math
import jax
import jax.numpy as jnp
from jax.experimental import pallas as pl
from jax.experimental.pallas import tpu as pltpu


def _round_up(x: int, m: int) -> int:
    return ((x + m - 1) // m) * m


def _cdiv(a: int, b: int) -> int:
    return (a + b - 1) // b


def _mnet_kernel(x1_ref, cb_ref, b_ref, o_ref):
    # x1_ref: (1, in1, TS)  channels-first spatial tile (S on lanes -> lane-dense DMA)
    # cb_ref: (1, out, 1)   precomputed x2 @ A^T + bias for this batch
    # b_ref:  (out, in1)    weight B (resident across the grid)
    # o_ref:  (1, TS, out)  channels-last output tile -> stored directly in the
    #                       module's (b, S, out) layout (no post-hoc XLA transpose)
    x1 = x1_ref[0]                                                     # (in1, TS)
    lin = jnp.dot(b_ref[...], x1,
                  preferred_element_type=jnp.float32)                  # (out, TS) MXU
    res = lin + cb_ref[0]                                              # + (out, 1) VPU
    # XLU transpose rides a free slot and stays hidden under the output DMA.
    o_ref[0] = jnp.transpose(res, (1, 0)).astype(o_ref.dtype)          # (TS, out)


def _pick_tile(S: int, in1: int, out: int, tile_cap: int):
    """Largest spatial tile (multiple of 128) that fits the pipelined VMEM budget."""
    # per-spatial-row VMEM cost in bytes (f32 tiles, (8,128) padding):
    in_row = _round_up(in1, 8) * 4            # (in1, TS) input tile, per lane column
    out_row = _round_up(out, 128) * 4         # (TS, out) output tile, per sublane row
    mid_row = _round_up(out, 8) * 4           # (out, TS) pre-transpose scratch
    per_row = 2 * (in_row + out_row) + mid_row + out_row   # 2x: double buffering
    try:
        vmem_cap = pltpu.get_tpu_info().vmem_capacity_bytes
    except Exception:
        vmem_cap = 64 << 20                   # v7x-safe fallback
    budget = min(vmem_cap // 2, 48 << 20)     # leave headroom; binds to 32 MiB on v7x
    ts = max(128, (budget // per_row) // 128 * 128)
    ts = min(ts, tile_cap, _round_up(S, 128))
    return ts, per_row


def multiplicative_net(input1, input2, A, B, bias, *, tile_s=32768, out_dtype=None):
    """input1: (b, t, h, w, in1); input2: (b, in2) or (b,); returns (b, t, h, w, out)."""
    if input2.ndim < 2:
        input2 = input2[:, None]

    bsz, t, h, w, in1 = input1.shape
    out = A.shape[0]
    S = t * h * w
    out_dtype = input1.dtype if out_dtype is None else out_dtype

    # Clamp user tile to a multiple of 128 (BlockSpec legality), then size by VMEM.
    tile_cap = max(128, (int(tile_s) // 128) * 128)
    TS, per_row = _pick_tile(S, in1, out, tile_cap)
    # Keep >= 2 grid steps when possible so v7x's two TensorCores both get work.
    while bsz * _cdiv(S, TS) < 2 and TS > 256:
        TS = max(128, _round_up(TS // 2, 128))
    Sp = _round_up(S, TS)
    n_s = Sp // TS

    # Channels-first, lane-dense spatial input: (b, in1, Sp). Zero-pad the tail
    # (padded columns are sliced off the output before return).
    x1_cf = jnp.transpose(input1.reshape(bsz, S, in1), (0, 2, 1))
    if Sp != S:
        x1_cf = jnp.pad(x1_cf, ((0, 0), (0, 0), (0, Sp - S)))

    # Hoisted degenerate matmul (M=1): code @ A^T + bias, shape (b, out, 1), f32.
    code_bias = (jnp.einsum('bj,oj->bo', input2, A) + bias)[:, :, None]
    code_bias = code_bias.astype(jnp.float32)

    out_itemsize = jnp.dtype(out_dtype).itemsize
    cost = pl.CostEstimate(
        flops=2 * bsz * Sp * in1 * out,
        transcendentals=0,
        bytes_accessed=(4 * (bsz * Sp * in1 + out * in1 + bsz * out)
                        + bsz * Sp * out * out_itemsize),
    )

    # Raise scoped VMEM to cover the double-buffered tiles (v5e default is ~16 MiB).
    vmem_limit = int(min(max(TS * per_row + (4 << 20), 32 << 20), 64 << 20))

    y = pl.pallas_call(
        _mnet_kernel,
        out_shape=jax.ShapeDtypeStruct((bsz, Sp, out), out_dtype),
        grid_spec=pltpu.PrefetchScalarGridSpec(
            num_scalar_prefetch=0,
            grid=(bsz, n_s),
            in_specs=[
                pl.BlockSpec((1, in1, TS), lambda b, s: (b, 0, s)),
                pl.BlockSpec((1, out, 1), lambda b, s: (b, 0, 0)),
                pl.BlockSpec((out, in1), lambda b, s: (0, 0)),
            ],
            out_specs=pl.BlockSpec((1, TS, out), lambda b, s: (b, s, 0)),
        ),
        compiler_params=pltpu.CompilerParams(
            dimension_semantics=("parallel", "parallel"),
            vmem_limit_bytes=vmem_limit),
        cost_estimate=cost,
    )(x1_cf, code_bias, B)

    if Sp != S:
        # Ragged spatial tail: one extra pass over the output. Avoided whenever
        # TS divides S (the common case for power-of-two / 128-multiple grids).
        y = y[:, :S, :]
    return y.reshape(bsz, t, h, w, out)


def init_params(key, in1_features, in2_features, out_features):
    """Deterministic init mimicking the PyTorch reset_parameters bounds."""
    kA, kB, kb = jax.random.split(key, 3)
    # kaiming_uniform_(a=sqrt(5)) -> bound = 1/sqrt(fan_in)
    bound_A = 1.0 / math.sqrt(in2_features)
    bound_B = 1.0 / math.sqrt(in1_features)
    bound_b = 1.0 / math.sqrt(in1_features)
    A = jax.random.uniform(kA, (out_features, in2_features), jnp.float32,
                           -bound_A, bound_A)
    B = jax.random.uniform(kB, (out_features, in1_features), jnp.float32,
                           -bound_B, bound_B)
    bias = jax.random.uniform(kb, (out_features,), jnp.float32,
                              -bound_b, bound_b)
    return A, B, bias


if __name__ == "__main__":
    key = jax.random.PRNGKey(0)
    k1, k2, kp = jax.random.split(key, 3)

    # Small shapes consistent with the forward pass:
    #   input1: (batch, t, h, w, in1_features)  -- spatial coordinates
    #   input2: (batch, in2_features)           -- code
    batch, t, h, w = 2, 2, 4, 4
    in1_features, in2_features, out_features = 3, 8, 32

    input1 = jax.random.normal(k1, (batch, t, h, w, in1_features), jnp.float32)
    input2 = jax.random.normal(k2, (batch, in2_features), jnp.float32)
    A, B, bias = init_params(kp, in1_features, in2_features, out_features)

    y = multiplicative_net(input1, input2, A, B, bias)
    y = jax.block_until_ready(y)

    # Pure-JAX reference check
    ref = (jnp.einsum('bthwi,oi->bthwo', input1, B)
           + jnp.einsum('bj,oj->bo', input2, A)[:, None, None, None, :]
           + bias)
    assert y.shape == (batch, t, h, w, out_features)
    assert y.dtype == input1.dtype
    assert jnp.allclose(y, ref, atol=1e-5, rtol=1e-5), "mismatch vs reference"

    print("KERNEL_OK")
</pallas_src>

<mosaic_0001>
module attributes {stable_mosaic.version = 11 : i64} {
  func.func @_mnet_kernel(%arg0: i32, %arg1: i32, %arg2: memref<1x3x128xf32, #tpu.memory_space<vmem>>, %arg3: memref<1x32x1xf32, #tpu.memory_space<vmem>>, %arg4: memref<32x3xf32, #tpu.memory_space<vmem>>, %arg5: memref<1x128x32xf32, #tpu.memory_space<vmem>>) attributes {dimension_semantics = [#tpu.dimension_semantics<parallel>, #tpu.dimension_semantics<parallel>], iteration_bounds = array<i64: 2, 1>, scalar_prefetch = 0 : i64, scratch_operands = 0 : i64, tpu.core_type = #tpu.core_type<tc>, window_params = [{transform_indices = @transform_0, window_bounds = array<i64: 1, 3, 128>}, {transform_indices = @transform_1, window_bounds = array<i64: 1, 32, 1>}, {pipeline_mode = #tpu.pipeline_mode<synchronous>, transform_indices = @transform_2, window_bounds = array<i64: 32, 3>}, {transform_indices = @transform_3, window_bounds = array<i64: 1, 128, 32>}]} {
    %c0 = arith.constant 0 : index
    %c0_0 = arith.constant 0 : index
    %c0_1 = arith.constant 0 : index
    %0 = vector.load %arg2[%c0, %c0_0, %c0_1] : memref<1x3x128xf32, #tpu.memory_space<vmem>>, vector<1x3x128xf32>
    %1 = vector.shape_cast %0 : vector<1x3x128xf32> to vector<3x128xf32>
    %c0_2 = arith.constant 0 : index
    %c0_3 = arith.constant 0 : index
    %2 = vector.load %arg4[%c0_2, %c0_3] : memref<32x3xf32, #tpu.memory_space<vmem>>, vector<32x3xf32>
    %cst = arith.constant dense<0.000000e+00> : vector<32x128xf32>
    %3 = tpu.matmul %2, %1, %cst {dimension_numbers = #tpu.dot_dimension_numbers<[1], [0], [0], [1], [0, 0, 1, 1], [], []>} : vector<32x3xf32>, vector<3x128xf32>, vector<32x128xf32> -> vector<32x128xf32>
    %c0_4 = arith.constant 0 : index
    %c0_5 = arith.constant 0 : index
    %c0_6 = arith.constant 0 : index
    %4 = vector.load %arg3[%c0_4, %c0_5, %c0_6] : memref<1x32x1xf32, #tpu.memory_space<vmem>>, vector<1x32x1xf32>
    %5 = vector.shape_cast %4 : vector<1x32x1xf32> to vector<32x1xf32>
    %6 = vector.broadcast %5 : vector<32x1xf32> to vector<32x128xf32>
    %7 = arith.addf %3, %6 : vector<32x128xf32>
    %8 = tpu.transpose %7, [1, 0] : vector<32x128xf32> -> vector<128x32xf32>
    %c0_7 = arith.constant 0 : index
    %c0_8 = arith.constant 0 : index
    %c0_9 = arith.constant 0 : index
    %9 = vector.load %arg5[%c0_7, %c0_8, %c0_9] : memref<1x128x32xf32, #tpu.memory_space<vmem>>, vector<1x128x32xf32>
    %10 = vector.shape_cast %9 : vector<1x128x32xf32> to vector<128x32xf32>
    %11 = vector.shape_cast %8 : vector<128x32xf32> to vector<1x128x32xf32>
    tpu.vector_store %arg5[%c0_7, %c0_8, %c0_9], %11 {strides = array<i32>} : memref<1x128x32xf32, #tpu.memory_space<vmem>>, vector<1x128x32xf32>,
    return
  }
  func.func @transform_0(%arg0: i32, %arg1: i32) -> (i32, i32, i32) {
    %c0_i32 = arith.constant 0 : i32
    %c0_i32_0 = arith.constant 0 : i32
    return %arg0, %c0_i32, %arg1 : i32, i32, i32
  }
  func.func @transform_1(%arg0: i32, %arg1: i32) -> (i32, i32, i32) {
    %c0_i32 = arith.constant 0 : i32
    %c0_i32_0 = arith.constant 0 : i32
    %c0_i32_1 = arith.constant 0 : i32
    return %arg0, %c0_i32, %c0_i32_0 : i32, i32, i32
  }
  func.func @transform_2(%arg0: i32, %arg1: i32) -> (i32, i32) {
    %c0_i32 = arith.constant 0 : i32
    %c0_i32_0 = arith.constant 0 : i32
    %c0_i32_1 = arith.constant 0 : i32
    return %c0_i32, %c0_i32_0 : i32, i32
  }
  func.func @transform_3(%arg0: i32, %arg1: i32) -> (i32, i32, i32) {
    %c0_i32 = arith.constant 0 : i32
    %c0_i32_0 = arith.constant 0 : i32
    return %arg0, %arg1, %c0_i32 : i32, i32, i32
  }
}

</mosaic_0001>

<bundles_post_ra>
// kernel: tpu_custom_call.1
= control target key start
LH: loop header
LB: loop body
LE: loop exit
PB: predicated region body
PF: predicated region fallthrough
CT: control target
= control target key end

     0   :  { %s605_s12 = smov 0   ;;  %s607_s13 = smov 0   ;;  %s696_s0 = inlined_call_operand.vmem [shape: f32[2,3,128], index: 0, kind: input, shape index: {}]   ;;  %s697_s1 = inlined_call_operand.vmem [shape: f32[2,32,1], index: 1, kind: input, shape index: {}]   ;;  %s698_s2 = inlined_call_operand.vmem [shape: f32[32,3], index: 2, kind: input, shape index: {}]   ;;  %s699_s3 = inlined_call_operand.vmem [shape: f32[2,128,32], index: 3, kind: output, shape index: {}]  }
   0x1   :  { %s609_s14 = smov 0  }
   0x2 LB: > { %s25_s15 = sadd.s32 1, %s578_s13  ;;  %p502_p0 = scmp.ge.s32.totalorder %s582_s14, 1  ;;  %s582_s14 = sphi %s609_s14, %s13_s14   ;;  %s578_s13 = sphi %s607_s13, %s701_s13   ;;  %s574_s12 = sphi %s605_s12, %s700_s12  }
   0x3   : > { %p27_p1 = scmp.ge.s32.totalorder %s25_s15, 2  ;;  %p165_p2 = scmp.lt.s32.totalorder %s582_s14, 3 }
   0x5   : > { %s703_s15 = smov (%p27_p1, %s25_s15), 0  ;;  %p166_p3 = pnand %p502_p0, %p165_p2 }
   0x6   : > { %p200_p4 = scmp.lt.s32.totalorder (!%p166_p3), %s574_s12, 1 }
   0x7   : > { %169 = sbr.rel (%p166_p3) target bundleno = 401 (0x191), region = 32 }
   0xc   : > { %v223_v0 = vld [vmem:[%s698_s2] sm:$0xff]  ;;  %vm251_vm0 = vcmask 23552   ;;  %v225_v1 = vld [vmem:[%s698_s2 + $0x10] sm:$0xff]  ;;  %s705_s12 = smov (!%p200_p4, %s574_s12), 1  ;;  %v584_v2 = vmov 0   ;;  %vm264_vm1 = vcmask 1042432  }
   0xd   : > { %524 = vmatprep.mubr.msk.f32.mxu0 %vm251_vm0, %v223_v0  ;;  %527 = vmatprep.mubr.msk.f32.mxu1 %vm251_vm0, %v225_v1  ;;  %s503_s20 = sshll.u32 %s705_s12, 2  ;;  %v224_v4 = vld [vmem:[%s698_s2 + $0x8] sm:$0xff]  ;;  %v226_v5 = vld [vmem:[%s698_s2 + $0x18] sm:$0xff]  ;;  %s515_s28 = sshll.u32 %s705_s12, 5  ;;  %vm385_vm2 = vcmask 261120  }
   0xe   : > { %558 = vset.pattern.permute.xlu0 %v584_v2  ;;  %559 = vset.pattern.permute.xlu1 %v584_v2  ;;  %s206_s23 = scalar_lea.vmem %s696_s0, %s503_s20  ;;  %s211_s4 = scalar_lea.vmem %s697_s1, %s515_s28 }
   0xf   : > { %v222_v3 = vld [vmem:[%s206_s23] sm:$0x7]  ;;  %v229_v7 = vld [vmem:[%s211_s4 + $0x10] sm:$0xff]  ;;  %v228_v8 = vld [vmem:[%s211_s4 + $0x8] sm:$0xff]  ;;  %s516_s5 = sshll.u32 %s705_s12, 7 }
  0x10   : > { %522 = vmatprep.subr.msk.mxu0 %vm264_vm1, %v222_v3  ;;  %530 = vmatprep.subr.msk.mxu1 %vm264_vm1, %v222_v3  ;;  %v227_v6 = vld [vmem:[%s211_s4] sm:$0xff]  ;;  %v230_v9 = vld [vmem:[%s211_s4 + $0x18] sm:$0xff]  ;;  %s653_s8 = scalar_lea.vmem %s699_s3, %s516_s5 }
  0x11   : > { %523 = vmatpush3.msk.msra.mxu0 %vm264_vm1, %v222_v3  ;;  %531 = vmatpush3.msk.msra.mxu1 %vm264_vm1, %v222_v3 }
  0x12   : > { %525 = vmatmul.mubr.msk.f32.vlgmr.msra.gmra.mxu0 %vm251_vm0, %v224_v4  ;;  %528 = vmatmul.mubr.msk.f32.vlgmr.msra.gmra.mxu1 %vm251_vm0, %v226_v5 }
  0x13   : > { %233 = vperm.xlu0 %558, %v227_v6   ;;  %243 = vperm.xlu1 %559, %v229_v7  }
  0x17   : > { %238 = vperm.xlu0 %558, %v228_v8   ;;  %248 = vperm.xlu1 %559, %v230_v9  }
  0x8e   : > { %v234_v10 = vpop.permute.xlu0 %233  ;;  %v244_v16 = vpop.permute.xlu1 %243 }
  0x92   : > { %v239_v14 = vpop.permute.xlu0 %238  ;;  %v249_v20 = vpop.permute.xlu1 %248 }
  0xd2   : > { %v526_v11 = vpop.f32.mrf.mxu0  ;;  %v529_v15 = vpop.f32.mrf.mxu1 }
  0xd3   : > { %v340_v17 = vadd.f32 %v526_v11, %v239_v14  ;;  %v350_v21 = vadd.f32 %v529_v15, %v249_v20 }
  0xd4   : > { %v334_v12 = vpop.f32.mrf.mxu0  ;;  %v344_v18 = vpop.f32.mrf.mxu1 }
  0xd5   : > { %v335_v13 = vadd.f32 %v334_v12, %v234_v10  ;;  %v345_v19 = vadd.f32 %v344_v18, %v244_v16 }
  0xd7   : > { %353 = vxpose.xlu0.b32.start [1/4] (short) %v335_v13, 128 }
  0xdb   : > { %354 = vxpose.xlu0.b32.cont [2/4] (short) %v340_v17, 128 }
  0xdf   : > { %355 = vxpose.xlu0.b32.cont [3/4] (short) %v345_v19, 128 }
  0xe3   : > { %356 = vxpose.xlu0.b32.end [4/4] (short) %v350_v21, 128 }
 0x153   : > { %v369_v22 = vpop.trf.xlu0 }
 0x154   : > { %386 = vst.msk [vmem:[%s653_s8] sm:$0xff] %vm385_vm2, %v369_v22 }
 0x157   : > { %v370_v23 = vpop.trf.xlu0 }
 0x158   : > { %387 = vst.msk [vmem:[%s653_s8 + $0x8] sm:$0xff] %vm385_vm2, %v370_v23 }
 0x15b   : > { %v371_v24 = vpop.trf.xlu0 }
 0x15c   : > { %388 = vst.msk [vmem:[%s653_s8 + $0x10] sm:$0xff] %vm385_vm2, %v371_v24 }
 0x15f   : > { %v372_v25 = vpop.trf.xlu0 }
 0x160   : > { %389 = vst.msk [vmem:[%s653_s8 + $0x18] sm:$0xff] %vm385_vm2, %v372_v25 }
 0x163   : > { %v373_v26 = vpop.trf.xlu0 }
 0x164   : > { %390 = vst.msk [vmem:[%s653_s8 + $0x20] sm:$0xff] %vm385_vm2, %v373_v26 }
 0x167   : > { %v374_v27 = vpop.trf.xlu0 }
 0x168   : > { %391 = vst.msk [vmem:[%s653_s8 + $0x28] sm:$0xff] %vm385_vm2, %v374_v27 }
 0x16b   : > { %v375_v28 = vpop.trf.xlu0 }
 0x16c   : > { %392 = vst.msk [vmem:[%s653_s8 + $0x30] sm:$0xff] %vm385_vm2, %v375_v28 }
 0x16f   : > { %v376_v29 = vpop.trf.xlu0 }
 0x170   : > { %393 = vst.msk [vmem:[%s653_s8 + $0x38] sm:$0xff] %vm385_vm2, %v376_v29 }
 0x173   : > { %v377_v30 = vpop.trf.xlu0 }
 0x174   : > { %394 = vst.msk [vmem:[%s653_s8 + $0x40] sm:$0xff] %vm385_vm2, %v377_v30 }
 0x177   : > { %v378_v31 = vpop.trf.xlu0 }
 0x178   : > { %395 = vst.msk [vmem:[%s653_s8 + $0x48] sm:$0xff] %vm385_vm2, %v378_v31 }
 0x17b   : > { %v379_v32 = vpop.trf.xlu0 }
 0x17c   : > { %396 = vst.msk [vmem:[%s653_s8 + $0x50] sm:$0xff] %vm385_vm2, %v379_v32 }
 0x17f   : > { %v380_v33 = vpop.trf.xlu0 }
 0x180   : > { %397 = vst.msk [vmem:[%s653_s8 + $0x58] sm:$0xff] %vm385_vm2, %v380_v33 }
 0x183   : > { %v381_v34 = vpop.trf.xlu0 }
 0x184   : > { %398 = vst.msk [vmem:[%s653_s8 + $0x60] sm:$0xff] %vm385_vm2, %v381_v34 }
 0x187   : > { %v382_v35 = vpop.trf.xlu0 }
 0x188   : > { %399 = vst.msk [vmem:[%s653_s8 + $0x68] sm:$0xff] %vm385_vm2, %v382_v35 }
 0x18b   : > { %v383_v36 = vpop.trf.xlu0 }
 0x18c   : > { %400 = vst.msk [vmem:[%s653_s8 + $0x70] sm:$0xff] %vm385_vm2, %v383_v36 }
 0x18f   : > { %v384_v37 = vpop.trf.xlu0 }
 0x190   : > { %401 = vst.msk [vmem:[%s653_s8 + $0x78] sm:$0xff] %vm385_vm2, %v384_v37 }
 0x191 PF: > { %s13_s14 = sadd.s32 1, %s582_s14   ;;  %s700_s12 = smov %s578_s13 }
 0x192   : > { %p10_p5 = scmp.ge.s32.totalorder %s13_s14, 4   ;;  %s701_s13 = smov %s703_s15 }
 0x194   :  { %12 = sbr.rel (!%p10_p5) target bundleno = 2 (0x2), region = 65 }

</bundles_post_ra>
